<compile_context>
chip_gen: v7x
topology: tpu7x:2x2x1
jax: 0.10.0
libtpu: 0.0.40
codegen_flags: <defaults>
</compile_context>

<pallas_src>
import functools
import math

import jax
import jax.numpy as jnp
from jax.experimental import pallas as pl
from jax.experimental.pallas import tpu as pltpu


def _rup(x, m):
    return (x + m - 1) // m * m


def _arm_conv_kernel(x_ref, w_ref, b_ref, o_ref, *, kh_sz, kw_sz,
                     dil_h, dil_w, row_stride):
    """One grid step = (batch element bi, output-row band hi).

    x_ref: (1, 1, Cin, band_m)   flattened-spatial input band (halo included)
    w_ref: (KH*KW, Cout, Cin)    gate-folded weights, tap-major (kh, kw)
    b_ref: (Cout, 1)             gate-folded bias, f32
    o_ref: (1, Cout, tile_m)     dense stride-1 output band, tile_m % 128 == 0
    """
    cout, tile_m = o_ref.shape[1], o_ref.shape[2]
    acc = jnp.zeros((cout, tile_m), jnp.float32)
    t = 0
    for kh in range(kh_sz):
        for kw in range(kw_sz):
            # Static lane offset of this tap inside the band (flattened H*W).
            off = kh * dil_h * row_stride + kw * dil_w
            win = x_ref[0, 0, :, off:off + tile_m]            # (Cin, tile_m)
            # Canonical (Cout, Cin) x (Cin, M) MXU dot with f32 accumulation;
            # no operand transpose, no scratch stores.
            acc = acc + jnp.dot(w_ref[t], win,
                                preferred_element_type=jnp.float32)
            t += 1
    o_ref[0] = (acc + b_ref[...]).astype(o_ref.dtype)


def _pick_tile_h(hc, wp, cout, cin, max_m=2048, vreg_budget=40):
    """Pick an output-row band height.  tile_m = tile_h * Wp_al is kept within
    a register budget (accumulator + one tap window) and around 512-2048 lanes
    so steps are few and stores are large and unmasked."""
    rows_per_128 = -(-cout // 8) + 2 * (-(-cin // 8))
    max_m_regs = max(128, (vreg_budget // max(rows_per_128, 1)) * 128)
    target_m = min(max_m, max_m_regs)
    th = max(1, target_m // _rup(wp, 16))
    if th >= 8:
        th = (th // 8) * 8          # multiple of 8 -> only 16-lane width align
    th = min(th, _rup(hc, 8))
    return max(th, 1)


def _vmem_limit_bytes(cin, cout, n_taps, band_m, tile_m, itemsize):
    """Rough per-step VMEM footprint (tiling-padded), doubled for the Pallas
    double buffers, with generous headroom; clamped so it is valid on
    v5e/v6e/v7x (48 MiB stays well under the 64 MiB v7x per-TC VMEM)."""
    in_blk = _rup(cin, 8) * _rup(band_m, 128) * itemsize
    w_blk = n_taps * _rup(cout, 8) * 128 * itemsize
    b_blk = _rup(cout, 8) * 128 * 4
    out_blk = _rup(cout, 8) * _rup(tile_m, 128) * 4
    est = 2 * (in_blk + w_blk + b_blk + out_blk) + out_blk
    return int(min(max(4 * est + (8 << 20), 16 << 20), 48 << 20))


def arm_conv2d_forward(x_nchw, weights, bias, z_phi, *,
                       stride=(1, 1), padding=(0, 0), dilation=(1, 1), k=7,
                       compute_dtype=jnp.float32, tile_h=None):
    """Matches ArmConv2d.forward in eval mode.

    x_nchw : (B, Cin, H, W)        float32
    weights: (Cout, Cin, KH, KW)   float32  (PyTorch layout)
    bias   : (Cout,) or None
    z_phi  : (Cout,)
    returns: (B, Cout, Ho, Wo)     float32  (PyTorch layout)
    """
    bsz, cin, h, w = x_nchw.shape
    cout, cin_w, kh, kw = weights.shape
    assert cin_w == cin
    sh, sw = stride
    ph, pw = padding
    dh, dw = dilation

    hp = h + 2 * ph
    wp = w + 2 * pw
    hc = hp - dh * (kh - 1)                  # dense (stride-1) output rows
    wc = wp - dw * (kw - 1)                  # dense (stride-1) valid output cols
    assert hc >= 1 and wc >= 1, "kernel larger than padded input"
    ho = (hc - 1) // sh + 1
    wo = (wc - 1) // sw + 1

    # ---- eval-mode gate folded into weights / bias (constant per call) ----
    pi = jax.nn.sigmoid(float(k) * z_phi.astype(jnp.float32))
    gate = jnp.where(pi < 0.5, 0.0, pi)                               # (Cout,)
    w_eff = weights.astype(jnp.float32) * gate[:, None, None, None]
    # (Cout, Cin, KH, KW) -> (KH, KW, Cout, Cin) -> (KH*KW, Cout, Cin)
    w_k = jnp.transpose(w_eff, (2, 3, 0, 1)).reshape(kh * kw, cout, cin)
    w_k = w_k.astype(compute_dtype)
    if bias is None:
        bias = jnp.zeros((cout,), jnp.float32)
    b2 = (bias.astype(jnp.float32) * gate).reshape(cout, 1)

    # ---- tiling: output-row bands, lane-dense tile_m = tile_h * Wp_al ----
    if tile_h is None:
        tile_h = _pick_tile_h(hc, wp, cout, cin)
    tile_h = max(1, min(int(tile_h), _rup(hc, 8)))
    g = 128 // math.gcd(tile_h, 128)
    wp_al = _rup(wp, g)                      # aligned width -> tile_m % 128 == 0
    tile_m = tile_h * wp_al
    hc_pad = _rup(hc, tile_h)
    n_ht = hc_pad // tile_h
    band_m = tile_m + (kh - 1) * dh * wp_al + (kw - 1) * dw
    l_need = (n_ht - 1) * tile_m + band_m

    # ---- input: pad NCHW spatially (+width alignment), cast once, flatten
    #      H*W onto the lane axis (Cin stays on sublanes), and materialize the
    #      overlapping per-band halo slices so every in-kernel read is a
    #      static, in-bounds lane slice and the pipeline DMAs only one band
    #      per step. ----
    x_c = x_nchw.astype(compute_dtype)
    x_pad = jnp.pad(x_c, ((0, 0), (0, 0), (ph, ph), (pw, pw + (wp_al - wp))))
    x_flat = x_pad.reshape(bsz, cin, hp * wp_al)
    x_flat = jnp.pad(x_flat, ((0, 0), (0, 0), (0, l_need - hp * wp_al)))
    bands = jnp.stack(
        [x_flat[:, :, i * tile_m:i * tile_m + band_m] for i in range(n_ht)],
        axis=1)                                       # (B, n_ht, Cin, band_m)

    kernel = functools.partial(
        _arm_conv_kernel,
        kh_sz=kh, kw_sz=kw, dil_h=dh, dil_w=dw, row_stride=wp_al)

    vmem_limit = _vmem_limit_bytes(cin, cout, kh * kw, band_m, tile_m,
                                   jnp.dtype(compute_dtype).itemsize)

    out_flat = pl.pallas_call(
        kernel,
        out_shape=jax.ShapeDtypeStruct((bsz, cout, hc_pad * wp_al), jnp.float32),
        grid_spec=pltpu.PrefetchScalarGridSpec(
            num_scalar_prefetch=0,
            grid=(bsz, n_ht),
            in_specs=[
                # One halo band per step (bounded VMEM, auto double-buffered).
                pl.BlockSpec((1, 1, cin, band_m), lambda bi, hi: (bi, hi, 0, 0)),
                # Gate-folded weights / bias: tiny, block index never changes.
                pl.BlockSpec((kh * kw, cout, cin), lambda bi, hi: (0, 0, 0)),
                pl.BlockSpec((cout, 1), lambda bi, hi: (0, 0)),
            ],
            out_specs=pl.BlockSpec((1, cout, tile_m), lambda bi, hi: (bi, 0, hi)),
        ),
        compiler_params=pltpu.CompilerParams(
            dimension_semantics=("parallel", "parallel"),
            vmem_limit_bytes=vmem_limit),
    )(bands, w_k, b2)

    # Dense stride-1 output over the aligned padded width -> crop the padded /
    # garbage columns and apply the stride by subsampling (one fused XLA slice).
    out = out_flat.reshape(bsz, cout, hc_pad, wp_al)[:, :, 0:hc:sh, 0:wc:sw]
    return out


def _reference_forward(x_nchw, weights, bias, z_phi, *, stride, padding, dilation, k):
    """Pure-JAX reference (lax conv) for correctness checking."""
    out = jax.lax.conv_general_dilated(
        x_nchw, weights,
        window_strides=stride,
        padding=[(padding[0], padding[0]), (padding[1], padding[1])],
        rhs_dilation=dilation,
        dimension_numbers=("NCHW", "OIHW", "NCHW"),
    )
    if bias is not None:
        out = out + bias.reshape(1, -1, 1, 1)
    pi = jax.nn.sigmoid(k * z_phi)
    gate = jnp.where(pi < 0.5, 0.0, pi)
    return out * gate.reshape(1, -1, 1, 1)


if __name__ == "__main__":
    # Small shapes consistent with the module.
    B, CIN, COUT, H, W = 2, 4, 8, 16, 16
    KH = KW = 3
    stride, padding, dilation, k = (1, 1), (1, 1), (1, 1), 7

    key = jax.random.PRNGKey(0)
    kx, kw_key, kz, kb = jax.random.split(key, 4)

    x = jax.random.normal(kx, (B, CIN, H, W), dtype=jnp.float32)

    # Parameter init mirroring reset_parameters():
    #  - weights: kaiming_normal_ fan_out -> std = sqrt(2 / (Cout * KH * KW))
    #  - z_phi:   Normal(3/7, 0.01); force two channels "pruned" (< 0) so the
    #             eval gate's zeroing branch is exercised.
    fan_out = COUT * KH * KW
    weights = jax.random.normal(kw_key, (COUT, CIN, KH, KW), jnp.float32) * jnp.sqrt(2.0 / fan_out)
    z_phi = 3.0 / 7.0 + 0.01 * jax.random.normal(kz, (COUT,), jnp.float32)
    z_phi = z_phi.at[COUT - 2:].set(-40.0 / 7.0)
    bias = 0.1 * jax.random.normal(kb, (COUT,), jnp.float32)

    ref = _reference_forward(x, weights, bias, z_phi,
                             stride=stride, padding=padding, dilation=dilation, k=k)

    # f32 MXU operands; explicit H tiling (tile_h=8 -> grid (B, 2)).
    out = arm_conv2d_forward(x, weights, bias, z_phi,
                             stride=stride, padding=padding, dilation=dilation, k=k,
                             compute_dtype=jnp.float32, tile_h=8)
    out = jax.block_until_ready(out)
    assert out.shape == (B, COUT, H, W), out.shape
    assert jnp.allclose(out, ref, atol=2e-4, rtol=2e-4), float(jnp.max(jnp.abs(out - ref)))

    # bf16 MXU operands (f32 accumulate), auto tile (single band here).
    out_bf16 = arm_conv2d_forward(x, weights, bias, z_phi,
                                  stride=stride, padding=padding, dilation=dilation, k=k,
                                  compute_dtype=jnp.bfloat16)
    out_bf16 = jax.block_until_ready(out_bf16)
    assert out_bf16.shape == (B, COUT, H, W), out_bf16.shape
    assert jnp.allclose(out_bf16, ref, atol=3e-2, rtol=3e-2), float(jnp.max(jnp.abs(out_bf16 - ref)))

    print("KERNEL_OK")
</pallas_src>

<mosaic_0001>
module attributes {stable_mosaic.version = 11 : i64} {
  func.func @_arm_conv_kernel(%arg0: i32, %arg1: i32, %arg2: memref<1x1x4x322xf32, #tpu.memory_space<vmem>>, %arg3: memref<9x8x4xf32, #tpu.memory_space<vmem>>, %arg4: memref<8x1xf32, #tpu.memory_space<vmem>>, %arg5: memref<1x8x256xf32, #tpu.memory_space<vmem>>) attributes {dimension_semantics = [#tpu.dimension_semantics<parallel>, #tpu.dimension_semantics<parallel>], iteration_bounds = array<i64: 2, 2>, scalar_prefetch = 0 : i64, scratch_operands = 0 : i64, tpu.core_type = #tpu.core_type<tc>, window_params = [{transform_indices = @transform_0, window_bounds = array<i64: 1, 1, 4, 322>}, {pipeline_mode = #tpu.pipeline_mode<synchronous>, transform_indices = @transform_1, window_bounds = array<i64: 9, 8, 4>}, {pipeline_mode = #tpu.pipeline_mode<synchronous>, transform_indices = @transform_2, window_bounds = array<i64: 8, 1>}, {transform_indices = @transform_3, window_bounds = array<i64: 1, 8, 256>}]} {
    %cst = arith.constant 0.000000e+00 : f32
    %0 = vector.broadcast %cst : f32 to vector<8x256xf32>
    %c0 = arith.constant 0 : index
    %c0_0 = arith.constant 0 : index
    %c0_1 = arith.constant 0 : index
    %c0_2 = arith.constant 0 : index
    %1 = vector.load %arg2[%c0, %c0_0, %c0_1, %c0_2] : memref<1x1x4x322xf32, #tpu.memory_space<vmem>>, vector<1x1x4x256xf32>
    %2 = vector.shape_cast %1 : vector<1x1x4x256xf32> to vector<4x256xf32>
    %c0_3 = arith.constant 0 : index
    %c0_4 = arith.constant 0 : index
    %c0_5 = arith.constant 0 : index
    %3 = vector.load %arg3[%c0_3, %c0_4, %c0_5] : memref<9x8x4xf32, #tpu.memory_space<vmem>>, vector<1x8x4xf32>
    %4 = vector.shape_cast %3 : vector<1x8x4xf32> to vector<8x4xf32>
    %cst_6 = arith.constant dense<0.000000e+00> : vector<8x256xf32>
    %5 = tpu.matmul %4, %2, %cst_6 {dimension_numbers = #tpu.dot_dimension_numbers<[1], [0], [0], [1], [0, 0, 1, 1], [], []>} : vector<8x4xf32>, vector<4x256xf32>, vector<8x256xf32> -> vector<8x256xf32>
    %6 = arith.addf %0, %5 : vector<8x256xf32>
    %c0_7 = arith.constant 0 : index
    %c0_8 = arith.constant 0 : index
    %c0_9 = arith.constant 0 : index
    %c1 = arith.constant 1 : index
    %7 = vector.load %arg2[%c0_7, %c0_8, %c0_9, %c1] : memref<1x1x4x322xf32, #tpu.memory_space<vmem>>, vector<1x1x4x256xf32>
    %8 = vector.shape_cast %7 : vector<1x1x4x256xf32> to vector<4x256xf32>
    %c1_10 = arith.constant 1 : index
    %c0_11 = arith.constant 0 : index
    %c0_12 = arith.constant 0 : index
    %9 = vector.load %arg3[%c1_10, %c0_11, %c0_12] : memref<9x8x4xf32, #tpu.memory_space<vmem>>, vector<1x8x4xf32>
    %10 = vector.shape_cast %9 : vector<1x8x4xf32> to vector<8x4xf32>
    %cst_13 = arith.constant dense<0.000000e+00> : vector<8x256xf32>
    %11 = tpu.matmul %10, %8, %cst_13 {dimension_numbers = #tpu.dot_dimension_numbers<[1], [0], [0], [1], [0, 0, 1, 1], [], []>} : vector<8x4xf32>, vector<4x256xf32>, vector<8x256xf32> -> vector<8x256xf32>
    %12 = arith.addf %6, %11 : vector<8x256xf32>
    %c0_14 = arith.constant 0 : index
    %c0_15 = arith.constant 0 : index
    %c0_16 = arith.constant 0 : index
    %c2 = arith.constant 2 : index
    %13 = vector.load %arg2[%c0_14, %c0_15, %c0_16, %c2] : memref<1x1x4x322xf32, #tpu.memory_space<vmem>>, vector<1x1x4x256xf32>
    %14 = vector.shape_cast %13 : vector<1x1x4x256xf32> to vector<4x256xf32>
    %c2_17 = arith.constant 2 : index
    %c0_18 = arith.constant 0 : index
    %c0_19 = arith.constant 0 : index
    %15 = vector.load %arg3[%c2_17, %c0_18, %c0_19] : memref<9x8x4xf32, #tpu.memory_space<vmem>>, vector<1x8x4xf32>
    %16 = vector.shape_cast %15 : vector<1x8x4xf32> to vector<8x4xf32>
    %cst_20 = arith.constant dense<0.000000e+00> : vector<8x256xf32>
    %17 = tpu.matmul %16, %14, %cst_20 {dimension_numbers = #tpu.dot_dimension_numbers<[1], [0], [0], [1], [0, 0, 1, 1], [], []>} : vector<8x4xf32>, vector<4x256xf32>, vector<8x256xf32> -> vector<8x256xf32>
    %18 = arith.addf %12, %17 : vector<8x256xf32>
    %c0_21 = arith.constant 0 : index
    %c0_22 = arith.constant 0 : index
    %c0_23 = arith.constant 0 : index
    %c32 = arith.constant 32 : index
    %19 = vector.load %arg2[%c0_21, %c0_22, %c0_23, %c32] : memref<1x1x4x322xf32, #tpu.memory_space<vmem>>, vector<1x1x4x256xf32>
    %20 = vector.shape_cast %19 : vector<1x1x4x256xf32> to vector<4x256xf32>
    %c3 = arith.constant 3 : index
    %c0_24 = arith.constant 0 : index
    %c0_25 = arith.constant 0 : index
    %21 = vector.load %arg3[%c3, %c0_24, %c0_25] : memref<9x8x4xf32, #tpu.memory_space<vmem>>, vector<1x8x4xf32>
    %22 = vector.shape_cast %21 : vector<1x8x4xf32> to vector<8x4xf32>
    %cst_26 = arith.constant dense<0.000000e+00> : vector<8x256xf32>
    %23 = tpu.matmul %22, %20, %cst_26 {dimension_numbers = #tpu.dot_dimension_numbers<[1], [0], [0], [1], [0, 0, 1, 1], [], []>} : vector<8x4xf32>, vector<4x256xf32>, vector<8x256xf32> -> vector<8x256xf32>
    %24 = arith.addf %18, %23 : vector<8x256xf32>
    %c0_27 = arith.constant 0 : index
    %c0_28 = arith.constant 0 : index
    %c0_29 = arith.constant 0 : index
    %c33 = arith.constant 33 : index
    %25 = vector.load %arg2[%c0_27, %c0_28, %c0_29, %c33] : memref<1x1x4x322xf32, #tpu.memory_space<vmem>>, vector<1x1x4x256xf32>
    %26 = vector.shape_cast %25 : vector<1x1x4x256xf32> to vector<4x256xf32>
    %c4 = arith.constant 4 : index
    %c0_30 = arith.constant 0 : index
    %c0_31 = arith.constant 0 : index
    %27 = vector.load %arg3[%c4, %c0_30, %c0_31] : memref<9x8x4xf32, #tpu.memory_space<vmem>>, vector<1x8x4xf32>
    %28 = vector.shape_cast %27 : vector<1x8x4xf32> to vector<8x4xf32>
    %cst_32 = arith.constant dense<0.000000e+00> : vector<8x256xf32>
    %29 = tpu.matmul %28, %26, %cst_32 {dimension_numbers = #tpu.dot_dimension_numbers<[1], [0], [0], [1], [0, 0, 1, 1], [], []>} : vector<8x4xf32>, vector<4x256xf32>, vector<8x256xf32> -> vector<8x256xf32>
    %30 = arith.addf %24, %29 : vector<8x256xf32>
    %c0_33 = arith.constant 0 : index
    %c0_34 = arith.constant 0 : index
    %c0_35 = arith.constant 0 : index
    %c34 = arith.constant 34 : index
    %31 = vector.load %arg2[%c0_33, %c0_34, %c0_35, %c34] : memref<1x1x4x322xf32, #tpu.memory_space<vmem>>, vector<1x1x4x256xf32>
    %32 = vector.shape_cast %31 : vector<1x1x4x256xf32> to vector<4x256xf32>
    %c5 = arith.constant 5 : index
    %c0_36 = arith.constant 0 : index
    %c0_37 = arith.constant 0 : index
    %33 = vector.load %arg3[%c5, %c0_36, %c0_37] : memref<9x8x4xf32, #tpu.memory_space<vmem>>, vector<1x8x4xf32>
    %34 = vector.shape_cast %33 : vector<1x8x4xf32> to vector<8x4xf32>
    %cst_38 = arith.constant dense<0.000000e+00> : vector<8x256xf32>
    %35 = tpu.matmul %34, %32, %cst_38 {dimension_numbers = #tpu.dot_dimension_numbers<[1], [0], [0], [1], [0, 0, 1, 1], [], []>} : vector<8x4xf32>, vector<4x256xf32>, vector<8x256xf32> -> vector<8x256xf32>
    %36 = arith.addf %30, %35 : vector<8x256xf32>
    %c0_39 = arith.constant 0 : index
    %c0_40 = arith.constant 0 : index
    %c0_41 = arith.constant 0 : index
    %c64 = arith.constant 64 : index
    %37 = vector.load %arg2[%c0_39, %c0_40, %c0_41, %c64] : memref<1x1x4x322xf32, #tpu.memory_space<vmem>>, vector<1x1x4x256xf32>
    %38 = vector.shape_cast %37 : vector<1x1x4x256xf32> to vector<4x256xf32>
    %c6 = arith.constant 6 : index
    %c0_42 = arith.constant 0 : index
    %c0_43 = arith.constant 0 : index
    %39 = vector.load %arg3[%c6, %c0_42, %c0_43] : memref<9x8x4xf32, #tpu.memory_space<vmem>>, vector<1x8x4xf32>
    %40 = vector.shape_cast %39 : vector<1x8x4xf32> to vector<8x4xf32>
    %cst_44 = arith.constant dense<0.000000e+00> : vector<8x256xf32>
    %41 = tpu.matmul %40, %38, %cst_44 {dimension_numbers = #tpu.dot_dimension_numbers<[1], [0], [0], [1], [0, 0, 1, 1], [], []>} : vector<8x4xf32>, vector<4x256xf32>, vector<8x256xf32> -> vector<8x256xf32>
    %42 = arith.addf %36, %41 : vector<8x256xf32>
    %c0_45 = arith.constant 0 : index
    %c0_46 = arith.constant 0 : index
    %c0_47 = arith.constant 0 : index
    %c65 = arith.constant 65 : index
    %43 = vector.load %arg2[%c0_45, %c0_46, %c0_47, %c65] : memref<1x1x4x322xf32, #tpu.memory_space<vmem>>, vector<1x1x4x256xf32>
    %44 = vector.shape_cast %43 : vector<1x1x4x256xf32> to vector<4x256xf32>
    %c7 = arith.constant 7 : index
    %c0_48 = arith.constant 0 : index
    %c0_49 = arith.constant 0 : index
    %45 = vector.load %arg3[%c7, %c0_48, %c0_49] : memref<9x8x4xf32, #tpu.memory_space<vmem>>, vector<1x8x4xf32>
    %46 = vector.shape_cast %45 : vector<1x8x4xf32> to vector<8x4xf32>
    %cst_50 = arith.constant dense<0.000000e+00> : vector<8x256xf32>
    %47 = tpu.matmul %46, %44, %cst_50 {dimension_numbers = #tpu.dot_dimension_numbers<[1], [0], [0], [1], [0, 0, 1, 1], [], []>} : vector<8x4xf32>, vector<4x256xf32>, vector<8x256xf32> -> vector<8x256xf32>
    %48 = arith.addf %42, %47 : vector<8x256xf32>
    %c0_51 = arith.constant 0 : index
    %c0_52 = arith.constant 0 : index
    %c0_53 = arith.constant 0 : index
    %c66 = arith.constant 66 : index
    %49 = vector.load %arg2[%c0_51, %c0_52, %c0_53, %c66] : memref<1x1x4x322xf32, #tpu.memory_space<vmem>>, vector<1x1x4x256xf32>
    %50 = vector.shape_cast %49 : vector<1x1x4x256xf32> to vector<4x256xf32>
    %c8 = arith.constant 8 : index
    %c0_54 = arith.constant 0 : index
    %c0_55 = arith.constant 0 : index
    %51 = vector.load %arg3[%c8, %c0_54, %c0_55] : memref<9x8x4xf32, #tpu.memory_space<vmem>>, vector<1x8x4xf32>
    %52 = vector.shape_cast %51 : vector<1x8x4xf32> to vector<8x4xf32>
    %cst_56 = arith.constant dense<0.000000e+00> : vector<8x256xf32>
    %53 = tpu.matmul %52, %50, %cst_56 {dimension_numbers = #tpu.dot_dimension_numbers<[1], [0], [0], [1], [0, 0, 1, 1], [], []>} : vector<8x4xf32>, vector<4x256xf32>, vector<8x256xf32> -> vector<8x256xf32>
    %54 = arith.addf %48, %53 : vector<8x256xf32>
    %c0_57 = arith.constant 0 : index
    %c0_58 = arith.constant 0 : index
    %55 = vector.load %arg4[%c0_57, %c0_58] : memref<8x1xf32, #tpu.memory_space<vmem>>, vector<8x1xf32>
    %56 = vector.broadcast %55 : vector<8x1xf32> to vector<8x256xf32>
    %57 = arith.addf %54, %56 : vector<8x256xf32>
    %c0_59 = arith.constant 0 : index
    %c0_60 = arith.constant 0 : index
    %c0_61 = arith.constant 0 : index
    %58 = vector.load %arg5[%c0_59, %c0_60, %c0_61] : memref<1x8x256xf32, #tpu.memory_space<vmem>>, vector<1x8x256xf32>
    %59 = vector.shape_cast %58 : vector<1x8x256xf32> to vector<8x256xf32>
    %60 = vector.shape_cast %57 : vector<8x256xf32> to vector<1x8x256xf32>
    tpu.vector_store %arg5[%c0_59, %c0_60, %c0_61], %60 {strides = array<i32>} : memref<1x8x256xf32, #tpu.memory_space<vmem>>, vector<1x8x256xf32>,
    return
  }
  func.func @transform_0(%arg0: i32, %arg1: i32) -> (i32, i32, i32, i32) {
    %c0_i32 = arith.constant 0 : i32
    %c0_i32_0 = arith.constant 0 : i32
    %c0_i32_1 = arith.constant 0 : i32
    return %arg0, %arg1, %c0_i32, %c0_i32_0 : i32, i32, i32, i32
  }
  func.func @transform_1(%arg0: i32, %arg1: i32) -> (i32, i32, i32) {
    %c0_i32 = arith.constant 0 : i32
    %c0_i32_0 = arith.constant 0 : i32
    %c0_i32_1 = arith.constant 0 : i32
    %c0_i32_2 = arith.constant 0 : i32
    return %c0_i32, %c0_i32_0, %c0_i32_1 : i32, i32, i32
  }
  func.func @transform_2(%arg0: i32, %arg1: i32) -> (i32, i32) {
    %c0_i32 = arith.constant 0 : i32
    %c0_i32_0 = arith.constant 0 : i32
    %c0_i32_1 = arith.constant 0 : i32
    return %c0_i32, %c0_i32_0 : i32, i32
  }
  func.func @transform_3(%arg0: i32, %arg1: i32) -> (i32, i32, i32) {
    %c0_i32 = arith.constant 0 : i32
    %c0_i32_0 = arith.constant 0 : i32
    return %arg0, %c0_i32, %arg1 : i32, i32, i32
  }
}

</mosaic_0001>

<bundles_post_ra>
// kernel: tpu_custom_call.1
= control target key start
LH: loop header
LB: loop body
LE: loop exit
PB: predicated region body
PF: predicated region fallthrough
CT: control target
= control target key end

     0   :  { %8 = vsyncpa [#allocation3], 0  ;;  %s1672_s0 = inlined_call_operand.vmem [shape: f32[2,2,4,322], index: 0, kind: input, shape index: {}]   ;;  %s1673_s1 = inlined_call_operand.vmem [shape: f32[9,8,4], index: 1, kind: input, shape index: {}]   ;;  %s1674_s2 = inlined_call_operand.vmem [shape: f32[8,1], index: 2, kind: input, shape index: {}]   ;;  %s1675_s3 = inlined_call_operand.hbm [shape: f32[2,8,512], index: 3, kind: output, shape index: {}]  }
   0x1   :  { %10 = vsyncpa [#allocation3 + $0x1], 0  ;;  %s1430_s12 = smov 0   ;;  %s1432_s13 = smov 0  }
   0x2   :  { %s1434_s14 = smov 0   ;;  %s1436_s15 = smov 0  }
   0x3   :  { %s1438_s16 = smov 0   ;;  %s1440_s17 = smov 0  }
   0x4   :  { %s1442_s18 = smov 0   ;;  %s1444_s19 = smov 0  }
   0x5 LB: > { %s1154_s20 = sadd.s32 4294967295, %s1397_s19   ;;  %s1155_s21 = sadd.s32 4294967294, %s1397_s19   ;;  %s1397_s19 = sphi %s1444_s19, %s16_s19   ;;  %s1393_s18 = sphi %s1442_s18, %s1684_s18   ;;  %s1389_s17 = sphi %s1440_s17, %s1683_s17   ;;  %s1385_s16 = sphi %s1438_s16, %s1682_s16   ;;  %s1381_s15 = sphi %s1436_s15, %s1681_s15   ;;  %s1377_s14 = sphi %s1434_s14, %s1680_s14   ;;  %s1373_s13 = sphi %s1432_s13, %s1679_s13   ;;  %s1369_s12 = sphi %s1430_s12, %s1678_s12  }
   0x6   : > { %s25_s22 = sadd.s32 1, %s1389_s17  ;;  %s28_s23 = sadd.s32 1, %s1393_s18 }
   0x7   : > { %p26_p0 = scmp.ge.s32.totalorder %s25_s22, 2  ;;  %p117_p1 = scmp.ne.s32.totalorder %s1377_s14, %s1373_s13 }
   0x8   : > { %p118_p2 = scmp.eq.s32.totalorder %s1154_s20, 3  ;;  %p123_p5 = scmp.ne.s32.totalorder %s1373_s13, %s1369_s12 }
   0x9   : > { %s1686_s22 = smov (%p26_p0, %s25_s22), 0  ;;  %s1688_s23 = smov (!%p26_p0, %s28_s23), %s1393_s18 }
   0xa   : > { %s103_s24 = ssub.s32 %s1389_s17, %s1686_s22  ;;  %p1481_p3 = por %p118_p2, %p117_p1 }
   0xb   : > { %p30_p4 = scmp.ge.s32.totalorder %s1688_s23, 2  ;;  %p124_p6 = scmp.eq.s32.totalorder %s1155_s21, 3 }
   0xc   : > { %p1158_p7 = scmp.ge.s32.totalorder %s1397_s19, 1  ;;  %p160_p9 = scmp.lt.s32.totalorder %s1397_s19, 5 }
   0xd   : > { %s1690_s23 = smov (%p30_p4, %s1688_s23), 0  ;;  %p1490_p8 = por %p124_p6, %p123_p5 }
   0xe   : > { %s102_s27 = ssub.s32 %s1393_s18, %s1690_s23  ;;  %s107_s28 = sadd.s32 1, %s1377_s14 }
   0xf   : > { %s104_s29 = sor.u32 %s103_s24, %s102_s27  ;;  %p161_p10 = pnand %p1158_p7, %p160_p9 }
  0x10   : > { %p105_p11 = scmp.eq.s32.totalorder %s104_s29, 0  ;;  %p188_p12 = scmp.lt.s32.totalorder (!%p161_p10), %s1385_s16, 1  ;;  %v1400_v3 = vmov (!%p161_p10), 0.0   ;;  %v1406_v10 = vmov (!%p161_p10), 0   ;;  %v1045_v12 = vld [vmem:[%s1674_s2] sm:$0xff] (!%p161_p10)  ;;  %vm212_vm0 = vcmask (!%p161_p10), 1039360  }
  0x11   : > { %164 = sbr.rel (%p161_p10) target bundleno = 425 (0x1a9), region = 32  ;;  %p190_p13 = scmp.lt.s32.totalorder (!%p161_p10), %s1381_s15, 1  ;;  %652 = vmatprep.mubr.f32.mxu0 (!%p161_p10), %v1400_v3  ;;  %288 = vmatprep.mubr.f32.mxu1 (!%p161_p10), %v1400_v3  ;;  %vm578_vm1 = vcmask (!%p161_p10), 777216   ;;  %vm219_vm2 = vcmask (!%p161_p10), 1043456   ;;  %vm215_vm3 = vcmask (!%p161_p10), 31744   ;;  %v1176_v23 = vld [vmem:[%s1673_s1 + $0x20] sm:$0xff] (!%p161_p10) }
  0x12   : > { %s1499_s30 = scalar_select %p105_p11, %s1377_s14, %s107_s28  }
  0x13   : > { %s1399_s21 = smov (!%p161_p10), 95   ;;  %s1401_s24 = smov (!%p161_p10), 127   ;;  %1301 = vset.pattern.permute.xlu0 (!%p161_p10), %v1406_v10  ;;  %v1161_v24 = vld [vmem:[%s1673_s1 + $0x8] sm:$0xff] (!%p161_p10)  ;;  %vm674_vm4 = vcmask (!%p161_p10), 769024   ;;  %v199_v32 = vld [vmem:[%s1673_s1] sm:$0xff] (!%p161_p10)  ;;  %vm770_vm5 = vcmask (!%p161_p10), 523264  }
  0x14   : > { %s1402_s27 = smov (!%p161_p10), 94   ;;  %s1403_s28 = smov (!%p161_p10), 64   ;;  %v1180_v31 = vld [vmem:[%s1673_s1 + $0x28] sm:$0xff] (!%p161_p10)  ;;  %vm386_vm6 = vcmask (!%p161_p10), 1031168   ;;  %v1184_v40 = vld [vmem:[%s1673_s1 + $0x30] sm:$0xff] (!%p161_p10)  ;;  %vm866_vm7 = vcmask (!%p161_p10), 515072  }
  0x15   : > { %s1404_s29 = smov (!%p161_p10), 126   ;;  %v1168_v46 = vld [vmem:[%s1673_s1 + $0x10] sm:$0xff] (!%p161_p10)  ;;  %v1188_v49 = vld [vmem:[%s1673_s1 + $0x38] sm:$0xff] (!%p161_p10)  ;;  %vm482_vm8 = vcmask (!%p161_p10), 785408   ;;  %vm962_vm9 = vcmask (!%p161_p10), 506880   ;;  %v1192_v59 = vld [vmem:[%s1673_s1 + $0x40] sm:$0xff] (!%p161_p10) }
  0x16   : > { %v1172_v58 = vld [vmem:[%s1673_s1 + $0x18] sm:$0xff] (!%p161_p10)  ;;  %s1409_s10 = smov (!%p161_p10), [#allocation2]  }
  0x17   : > { %s1307_s11 = sshll.u32 (!%p161_p10), %s1409_s10, 4  ;;  %s1308_s11 = int_to_ptr.vmem [resolvable:$false] %s1307_s11 }
  0x18   : > { %s189_s4 = scalar_select %p188_p12, %s1385_s16, 1 }
  0x19   : > { %s191_s5 = scalar_select %p190_p13, %s1381_s15, 1 }
  0x1a   : > { %s1219_s6 = smul.u32 6, %s189_s4  ;;  %s1405_s4 = smov 63  }
  0x1b   : > { %s1218_s7 = smul.u32 3, %s191_s5  ;;  %s1407_s5 = smov 96  }
  0x1d   : > { %s194_s8 = sadd.s32 %s1219_s6, %s1218_s7  ;;  %s1408_s6 = smov 62  }
  0x1e   : > { %s1160_s9 = sshll.u32 %s194_s8, 2 }
  0x1f   : > { %s1508_s20 = scalar_lea.vmem %s1672_s0, %s1160_s9 }
  0x20   : > { %v566_v0 = vld [vmem:[%s1508_s20 + $0x8] sm:$0xf]  ;;  %v1512_v1 = vld [vmem:[%s1508_s20] sm:$0xff] }
  0x21   : > { %576 = vrot.lane.b32.xlu0 %v566_v0, %s1399_s21  ;;  %572 = vrot.lane.b32.xlu1 %v1512_v1, %s1399_s21  ;;  %v200_v2 = vld [vmem:[%s1508_s20 + $0x8] sm:$0xf]  ;;  %v1520_v4 = vcombine.high %v1512_v1, %v1512_v1 }
  0x22   : > { %v662_v5 = vld [vmem:[%s1508_s20 + $0x8] sm:$0xf] }
  0x23   : > { %v758_v6 = vld [vmem:[%s1508_s20 + $0x8] sm:$0xf] }
  0x24   : > { %v374_v7 = vld [vmem:[%s1508_s20 + $0x8] sm:$0xf] }
  0x25   : > { %210 = vrot.lane.b32.xlu0 %v200_v2, %s1401_s24  ;;  %206 = vrot.lane.b32.xlu1 %v1512_v1, %s1401_s24  ;;  %v854_v8 = vld [vmem:[%s1508_s20 + $0x8] sm:$0xf] }
  0x26   : > { %v470_v9 = vld [vmem:[%s1508_s20 + $0x8] sm:$0xf] }
  0x27   : > { %v950_v11 = vld [vmem:[%s1508_s20 + $0x8] sm:$0xf]  ;;  %s1309_s20 = scalar_lea.vmem %s1308_s11, 512 }
  0x29   : > { %574 = vrot.lane.b32.xlu0 %v1520_v4, %s1399_s21  ;;  %208 = vrot.lane.b32.xlu1 %v1520_v4, %s1401_s24  ;;  %s185_s21 = sand.u32 1, %s1373_s13  }
  0x2a   : > { %s1159_s24 = sshll.u32 %s185_s21, 4 }
  0x2d   : > { %672 = vrot.lane.b32.xlu0 %v662_v5, %s1402_s27  ;;  %670 = vrot.lane.b32.xlu1 %v1520_v4, %s1402_s27 }
  0x31   : > { %668 = vrot.lane.b32.xlu0 %v1512_v1, %s1402_s27  ;;  %766 = vrot.lane.b32.xlu1 %v1520_v4, %s1403_s28  ;;  %s1197_s27 = sshll.u32 %s1381_s15, 1  ;;  %s1056_s15 = scalar_lea.sflag [#allocation3], %s185_s21 }
  0x35   : > { %768 = vrot.lane.b32.xlu0 %v758_v6, %s1403_s28  ;;  %764 = vrot.lane.b32.xlu1 %v1512_v1, %s1403_s28  ;;  %s1198_s28 = sshll.u32 %s1385_s16, 2 }
  0x39   : > { %382 = vrot.lane.b32.xlu0 %v1520_v4, %s1404_s29  ;;  %384 = vrot.lane.b32.xlu1 %v374_v7, %s1404_s29 }
  0x3d   : > { %862 = vrot.lane.b32.xlu0 %v1520_v4, %s1405_s4  ;;  %864 = vrot.lane.b32.xlu1 %v854_v8, %s1405_s4 }
  0x41   : > { %380 = vrot.lane.b32.xlu0 %v1512_v1, %s1404_s29  ;;  %860 = vrot.lane.b32.xlu1 %v1512_v1, %s1405_s4  ;;  %s1068_s29 = sadd.s32 %s1198_s28, %s1197_s27 }
  0x42   : > { %s1199_s4 = sshll.u32 %s1068_s29, 7 }
  0x43   : > { %s1619_s9 = scalar_lea.hbm %s1675_s3, %s1199_s4 }
  0x45   : > { %478 = vrot.lane.b32.xlu0 %v1520_v4, %s1407_s5  ;;  %480 = vrot.lane.b32.xlu1 %v470_v9, %s1407_s5 }
  0x49   : > { %958 = vrot.lane.b32.xlu0 %v1520_v4, %s1408_s6  ;;  %960 = vrot.lane.b32.xlu1 %v950_v11, %s1408_s6 }
  0x4d   : > { %476 = vrot.lane.b32.xlu0 %v1512_v1, %s1407_s5  ;;  %956 = vrot.lane.b32.xlu1 %v1512_v1, %s1408_s6  ;;  %s187_s5 = scalar_lea.vmem [#allocation2], %s1159_s24 }
  0x4e   : > { %s1072_s6 = sshll.u32 %s187_s5, 4  ;;  %s1621_s6 = int_to_ptr.vmem [resolvable:$true] %s1072_s6 }
  0x4f   : > { %s1303_s16 = scalar_lea.vmem %s1621_s6, 256  ;;  %p1310_p4 = scmp.lt.s32.totalorder %s1621_s6, %s1308_s11 }
  0x50   : > { %p1304_p0 = scmp.ne.s32.totalorder %s1621_s6, %s1303_s16  ;;  %p1311_p5 = scmp.lt.s32.totalorder %s1309_s20, %s1303_s16 }
  0x51   : > { %1048 = vperm.xlu0 %1301, %v1045_v12  }
  0x52   : > { %p1305_p1 = pnand %p1304_p0, %p1481_p3  ;;  %p1312_p6 = por %p1311_p5, %p1310_p4 }
  0x54   : > { %p1306_p2 = pneg %p1305_p1 }
  0x56   : > { %p1313_p7 = pnand %p1312_p6, %p1306_p2 }
  0x93   : > { %v577_v13 = vpop.permute.xlu0 %576  ;;  %v573_v14 = vpop.permute.xlu1 %572 }
  0x97   : > { %v211_v15 = vpop.permute.xlu0 %210  ;;  %v207_v16 = vpop.permute.xlu1 %206 }
  0x9b   : > { %v575_v17 = vpop.permute.xlu0 %574  ;;  %v209_v18 = vpop.permute.xlu1 %208 }
  0x9c   : > { %v214_v19 = vsel %vm212_vm0, %v209_v18, %v211_v15  ;;  %v580_v20 = vsel %vm578_vm1, %v575_v17, %v577_v13  ;;  %v213_v21 = vsel %vm212_vm0, %v207_v16, %v209_v18  ;;  %v579_v22 = vsel %vm578_vm1, %v573_v14, %v575_v17 }
  0x9d   : > { %1162 = vmatprep.subr.msk.mxu1 %vm219_vm2, %v214_v19  ;;  %1177 = vmatprep.subr.msk.mxu0 %vm219_vm2, %v580_v20 }
  0x9e   : > { %1163 = vmatpush1.msk.msra.mxu1 %vm219_vm2, %v213_v21  ;;  %1178 = vmatpush1.msk.msra.mxu0 %vm219_vm2, %v579_v22 }
  0x9f   : > { %v673_v25 = vpop.permute.xlu0 %672  ;;  %v671_v26 = vpop.permute.xlu1 %670  ;;  %1179 = vmatmul.mubr.msk.f32.vlgmr.msra.gmra.mrb[0].mxu0 %vm215_vm3, %v1176_v23  ;;  %1164 = vmatmul.mubr.msk.f32.vlgmr.msra.gmra.mrb[0].mxu1 %vm215_vm3, %v1161_v24 }
  0xa0   : > { %v676_v27 = vsel %vm674_vm4, %v671_v26, %v673_v25  ;;  %748 = vmatprep.mubr.f32.mxu0 %v1400_v3  ;;  %1165 = vmatprep.subr.msk.mxu1 %vm219_vm2, %v1520_v4 }
  0xa1   : > { %1181 = vmatprep.subr.msk.mxu0 %vm219_vm2, %v676_v27  ;;  %1166 = vmatpush1.msk.msra.mxu1 %vm219_vm2, %v1512_v1 }
  0xa2   : > { %366 = vmatprep.mubr.f32.mxu1 %v1400_v3 }
  0xa3   : > { %v669_v28 = vpop.permute.xlu0 %668  ;;  %v767_v29 = vpop.permute.xlu1 %766 }
  0xa4   : > { %v675_v30 = vsel %vm674_vm4, %v669_v28, %v671_v26 }
  0xa5   : > { %1182 = vmatpush1.msk.msra.mxu0 %vm219_vm2, %v675_v30 }
  0xa7   : > { %v769_v33 = vpop.permute.xlu0 %768  ;;  %v765_v34 = vpop.permute.xlu1 %764  ;;  %1183 = vmatmul.mubr.msk.f32.vlgmr.msra.gmra.mrb[0].mxu0 %vm215_vm3, %v1180_v31  ;;  %1167 = vmatmul.mubr.msk.f32.vlgmr.msra.gmra.mrb[0].mxu1 %vm215_vm3, %v199_v32 }
  0xa8   : > { %v772_v35 = vsel %vm770_vm5, %v767_v29, %v769_v33  ;;  %v771_v36 = vsel %vm770_vm5, %v765_v34, %v767_v29  ;;  %844 = vmatprep.mubr.f32.mxu0 %v1400_v3  ;;  %460 = vmatprep.mubr.f32.mxu1 %v1400_v3 }
  0xa9   : > { %1185 = vmatprep.subr.msk.mxu0 %vm219_vm2, %v772_v35 }
  0xaa   : > { %1186 = vmatpush1.msk.msra.mxu0 %vm219_vm2, %v771_v36 }
  0xab   : > { %v383_v37 = vpop.permute.xlu0 %382  ;;  %v385_v38 = vpop.permute.xlu1 %384 }
  0xac   : > { %v388_v39 = vsel %vm386_vm6, %v383_v37, %v385_v38 }
  0xad   : > { %1169 = vmatprep.subr.msk.mxu1 %vm219_vm2, %v388_v39 }
  0xaf   : > { %v863_v41 = vpop.permute.xlu0 %862  ;;  %v865_v42 = vpop.permute.xlu1 %864  ;;  %1187 = vmatmul.mubr.msk.f32.vlgmr.msra.gmra.mrb[0].mxu0 %vm215_vm3, %v1184_v40 }
  0xb0   : > { %v868_v43 = vsel %vm866_vm7, %v863_v41, %v865_v42  ;;  %940 = vmatprep.mubr.f32.mxu0 %v1400_v3 }
  0xb1   : > { %1189 = vmatprep.subr.msk.mxu0 %vm219_vm2, %v868_v43 }
  0xb3   : > { %v381_v44 = vpop.permute.xlu0 %380  ;;  %v861_v45 = vpop.permute.xlu1 %860 }
  0xb4   : > { %v387_v47 = vsel %vm386_vm6, %v381_v44, %v383_v37  ;;  %v867_v48 = vsel %vm866_vm7, %v861_v45, %v863_v41 }
  0xb5   : > { %1170 = vmatpush1.msk.msra.mxu1 %vm219_vm2, %v387_v47  ;;  %1190 = vmatpush1.msk.msra.mxu0 %vm219_vm2, %v867_v48 }
  0xb6   : > { %1171 = vmatmul.mubr.msk.f32.vlgmr.msra.gmra.mrb[0].mxu1 %vm215_vm3, %v1168_v46 }
  0xb7   : > { %v479_v50 = vpop.permute.xlu0 %478  ;;  %v481_v51 = vpop.permute.xlu1 %480  ;;  %1191 = vmatmul.mubr.msk.f32.vlgmr.msra.gmra.mrb[0].mxu0 %vm215_vm3, %v1188_v49  ;;  %556 = vmatprep.mubr.f32.mxu1 %v1400_v3 }
  0xb8   : > { %v484_v52 = vsel %vm482_vm8, %v479_v50, %v481_v51  ;;  %1036 = vmatprep.mubr.f32.mxu0 %v1400_v3 }
  0xb9   : > { %1173 = vmatprep.subr.msk.mxu1 %vm219_vm2, %v484_v52 }
  0xbb   : > { %v959_v53 = vpop.permute.xlu0 %958  ;;  %v961_v54 = vpop.permute.xlu1 %960 }
  0xbc   : > { %v964_v55 = vsel %vm962_vm9, %v959_v53, %v961_v54 }
  0xbd   : > { %1193 = vmatprep.subr.msk.mxu0 %vm219_vm2, %v964_v55 }
  0xbf   : > { %v477_v56 = vpop.permute.xlu0 %476  ;;  %v957_v57 = vpop.permute.xlu1 %956 }
  0xc0   : > { %v483_v60 = vsel %vm482_vm8, %v477_v56, %v479_v50  ;;  %v963_v61 = vsel %vm962_vm9, %v957_v57, %v959_v53 }
  0xc1   : > { %1174 = vmatpush1.msk.msra.mxu1 %vm219_vm2, %v483_v60  ;;  %1194 = vmatpush1.msk.msra.mxu0 %vm219_vm2, %v963_v61 }
  0xc2   : > { %1175 = vmatmul.mubr.msk.f32.vlgmr.msra.gmra.mrb[0].mxu1 %vm215_vm3, %v1172_v58  ;;  %1195 = vmatmul.mubr.msk.f32.vlgmr.msra.gmra.mrb[0].mxu0 %vm215_vm3, %v1192_v59 }
  0xd0   : > { %v1049_v62 = vpop.permute.xlu0 %1048 }
 0x195   : > { %v558_v63 = vpop.f32.mrb[0].mxu1  ;;  %v1038_v0 = vpop.f32.mrb[0].mxu0 }
 0x196   : > { %v1202_v1 = vadd.f32 %v1038_v0, %v558_v63  ;;  %v560_v2 = vpop.f32.mrb[1].mxu1  ;;  %v1040_v3 = vpop.f32.mrb[1].mxu0 }
 0x197   : > { %v1203_v4 = vadd.f32 %v1040_v3, %v560_v2 }
 0x198   : > { %v1051_v5 = vadd.f32 %v1202_v1, %v1049_v62 }
 0x199   : > { %v1052_v6 = vadd.f32 %v1203_v4, %v1049_v62 }
 0x19a   : > { %1053 = vst [vmem:[%s187_s5] sm:$0xff] %v1051_v5 }
 0x19b   : > { %1054 = vst [vmem:[%s187_s5 + $0x8] sm:$0xff] %v1052_v6 }
 0x19c   : > { %1316 = shalt.err (!%p1313_p7)
}
 0x19d   : > { %s1317_s21 = scalar_lea.hbm %s1619_s9, 256  ;;  %s1321_s28 = scalar_lea.hbm %s1675_s3, 1024 }
 0x19e   : > { %p1318_p9 = scmp.ne.s32.totalorder %s1619_s9, %s1317_s21  ;;  %p1322_p12 = scmp.lt.u32.totalorder %s1619_s9, %s1675_s3 }
 0x19f   : > { %p1323_p13 = scmp.lt.u32.totalorder %s1321_s28, %s1317_s21  ;;  %p1325_p1 = scmp.lt.u32.totalorder %s1317_s21, %s1619_s9 }
 0x1a0   : > { %p1319_p10 = pnand %p1318_p9, %p1481_p3 }
 0x1a1   : > { %p1324_p0 = por %p1323_p13, %p1322_p12 }
 0x1a2   : > { %p1320_p11 = pneg %p1319_p10 }
 0x1a3   : > { %p1326_p2 = por %p1325_p1, %p1324_p0 }
 0x1a5   : > { %p1327_p4 = pnand %p1326_p2, %p1320_p11 }
 0x1a7   : > { %1330 = shalt.err (!%p1327_p4)
}
 0x1a8   : > { %1220 = dma.vmem_to_hbm [thread:$0]  (%p1481_p3), %s1621_s6, 256, %s1619_s9, %s1056_s15  }
 0x1a9 PF: > { %p1226_p5 = scmp.ge.s32.totalorder %s1397_s19, 2  ;;  %s1084_s5 = sand.u32 1, %s1369_s12  }
 0x1aa   : > { %s1085_s7 = scalar_lea.sflag [#allocation3], %s1084_s5 }
 0x1ab   : > { %p1223_p6 = pnand %p1226_p5, %p1490_p8 }
 0x1ad   : > { %1364 = dma.done.wait (!%p1223_p6), %s1085_s7, 256  }
 0x1ae   : > { %1366 = vsyncadd (!%p1223_p6), %s1085_s7, 4294967040  ;;  %s16_s19 = sadd.s32 1, %s1397_s19   ;;  %s1678_s12 = smov %s1373_s13 }
 0x1af   : > { %p13_p7 = scmp.ge.s32.totalorder %s16_s19, 6   ;;  %s1679_s13 = smov %s1377_s14 }
 0x1b0   : > { %s1680_s14 = smov %s1499_s30  ;;  %s1681_s15 = smov %s1389_s17 }
 0x1b1   : > { %s1682_s16 = smov %s1393_s18  ;;  %s1683_s17 = smov %s1686_s22 }
 0x1b2   : > { %s1684_s18 = smov %s1690_s23  ;;  %15 = sbr.rel (!%p13_p7) target bundleno = 5 (0x5), region = 75 }
 0x1b9   :  { %1090 = vsyncpa [#allocation3], 1 }
 0x1ba   :  { %1092 = vsyncpa [#allocation3 + $0x1], 1 }

</bundles_post_ra>
